<compile_context>
chip_gen: v6e
topology: v6e:2x2x1
jax: 0.10.0
libtpu: 0.0.40
codegen_flags: <defaults>
</compile_context>

<pallas_src>
import jax
import jax.numpy as jnp
from jax.experimental import pallas as pl
from jax.experimental.pallas import tpu as pltpu

# ---- Scaled-down dims consistent with the module's structure -------------
# (real model: WHISPER_EMBED_DIM=1280, QWEN_DIM=3584, WHISPER_MAX_LENGTH=448)
WHISPER_EMBED_DIM = 128     # D_in (K)
QWEN_DIM = 256              # D_out (N)
WHISPER_MAX_LENGTH = 64     # T (number of query tokens)


# --------------------------------------------------------------------------
# Kernel
# --------------------------------------------------------------------------
def _qformer_proj_kernel(q_ref, w_ref, b_ref, o_ref):
    """Grid = (N // tn,).  Single matmul + bias add per output tile.

    q_ref : (T, K)   bf16 query tokens (same block every step -> no re-DMA)
    w_ref : (K, tn)  bf16 projection-weight tile (D_in, D_out layout)
    b_ref : (1, tn)  f32 bias tile
    o_ref : (T, tn)  output tile (bf16 by default)
    """
    acc = jnp.dot(q_ref[...], w_ref[...], preferred_element_type=jnp.float32)
    o_ref[...] = (acc + b_ref[...]).astype(o_ref.dtype)


# --------------------------------------------------------------------------
# Tiling helpers
# --------------------------------------------------------------------------
def _working_set_bytes(T, K, tn, out_itemsize):
    """Double-buffered VMEM bytes for one pipeline stage at tile width tn."""
    q = T * K * 2                      # bf16 query tokens
    w = K * tn * 2                     # bf16 weight tile
    b = 8 * tn * 4                     # f32 bias tile (padded to 8 sublanes)
    o = T * tn * out_itemsize          # output tile
    return 2 * (q + w + b + o)         # default 2-deep pipelining


def _choose_tn(T, K, N, out_itemsize, vmem_budget=32 * 1024 * 1024):
    """Pick the output-tile width per the perf-review preference order."""
    # 1) Whole-N tile if it fits: grid=(1,), no per-step overhead (v5e/v6e).
    if _working_set_bytes(T, K, N, out_itemsize) <= vmem_budget:
        return N
    cands = [tn for tn in range(N - 128, 0, -128)
             if N % tn == 0 and tn % 128 == 0]
    # 2) Largest fitting tn with an EVEN tile count (balances v7x's two TCs),
    #    preferring multiples of 256 (full MXU width on v6e/v7x).
    for prefer_256 in (True, False):
        for tn in cands:
            if (N // tn) % 2 != 0:
                continue
            if prefer_256 and tn % 256 != 0:
                continue
            if _working_set_bytes(T, K, tn, out_itemsize) <= vmem_budget:
                return tn
    # 3) Fall back to the largest fitting tile of any count.
    for tn in cands:
        if _working_set_bytes(T, K, tn, out_itemsize) <= vmem_budget:
            return tn
    return 128


# --------------------------------------------------------------------------
# Forward
# --------------------------------------------------------------------------
def qformer_forward(x, query_tokens, proj_w_t, proj_b, *, tn=None,
                    out_dtype=jnp.bfloat16):
    """Pallas implementation of QFormer.forward (decoder treated as identity).

    x            : (B, S_enc, D_in)  encoder hidden states (unused, see TODO)
    query_tokens : (T, D_in)         learned query tokens (bf16 recommended)
    proj_w_t     : (D_in, D_out)     Linear weight, pre-transposed (bf16 rec.)
    proj_b       : (D_out,) or (1, D_out)  Linear bias (f32)
    returns      : (B, T, D_out)     batch axis is a lazy broadcast
    """
    B = x.shape[0]
    T, K = query_tokens.shape
    N = proj_w_t.shape[1]

    out_itemsize = jnp.dtype(out_dtype).itemsize
    if tn is None:
        tn = _choose_tn(T, K, N, out_itemsize)
    tn = min(tn, N)
    assert N % tn == 0, "D_out must be divisible by tn"
    assert tn % 128 == 0, "tn must be a multiple of 128 (lane-dense stores)"

    # Params are expected to already be bf16 (cast hoisted to init/load time);
    # these astype calls are no-ops in that case.
    q_bf16 = query_tokens.astype(jnp.bfloat16)
    w_bf16 = proj_w_t.astype(jnp.bfloat16)
    b_f32 = proj_b.astype(jnp.float32).reshape(1, N)

    # VMEM limit derived from the actual working set, + headroom, capped well
    # under v7x's 64 MiB physical VMEM per TensorCore.
    ws = _working_set_bytes(T, K, tn, out_itemsize)
    vmem_limit = int(min(max(ws + (8 << 20), 16 << 20), 56 << 20))

    cost = pl.CostEstimate(
        flops=2 * T * K * N,
        transcendentals=0,
        bytes_accessed=(T * K * 2 + K * N * 2 + N * 4 + T * N * out_itemsize),
    )

    out_tn = pl.pallas_call(
        _qformer_proj_kernel,
        out_shape=jax.ShapeDtypeStruct((T, N), out_dtype),
        grid_spec=pltpu.PrefetchScalarGridSpec(
            num_scalar_prefetch=0,
            grid=(N // tn,),
            in_specs=[
                # Query tokens: full (T, K) block, identical index every step
                # (Pallas skips the re-DMA).
                pl.BlockSpec((T, K), lambda j: (0, 0)),
                # Weight slab for this output tile.
                pl.BlockSpec((K, tn), lambda j: (0, j)),
                # Bias slab.
                pl.BlockSpec((1, tn), lambda j: (0, j)),
            ],
            out_specs=pl.BlockSpec((T, tn), lambda j: (0, j)),
        ),
        compiler_params=pltpu.CompilerParams(
            # Single parallel axis -> shards across both TCs on v7x when the
            # tile count is even; a serial loop on single-TC v5e/v6e.
            dimension_semantics=("parallel",),
            vmem_limit_bytes=vmem_limit,
        ),
        cost_estimate=cost,
    )(q_bf16, w_bf16, b_f32)

    # The per-batch outputs are identical by construction: broadcast lazily.
    # TODO(synk): audit the consumer so it does not materialize B copies.
    return jnp.broadcast_to(out_tn[None], (B, T, N))


# --------------------------------------------------------------------------
# Params (casts hoisted here, once, instead of per forward call)
# --------------------------------------------------------------------------
def init_params(key):
    k1, k2, k3 = jax.random.split(key, 3)
    # query_tokens ~ N(0, 1), like torch.randn; stored in bf16 for the MXU.
    query_tokens = jax.random.normal(
        k1, (WHISPER_MAX_LENGTH, WHISPER_EMBED_DIM), dtype=jnp.float32
    ).astype(jnp.bfloat16)
    # nn.Linear default init: U(-1/sqrt(fan_in), 1/sqrt(fan_in)); weight is
    # stored already transposed to (D_in, D_out) and in bf16.
    bound = 1.0 / (WHISPER_EMBED_DIM ** 0.5)
    proj_w_t = jax.random.uniform(
        k2, (WHISPER_EMBED_DIM, QWEN_DIM), dtype=jnp.float32,
        minval=-bound, maxval=bound,
    ).astype(jnp.bfloat16)
    # Bias stays f32 (tiny; added after the f32 accumulation).
    proj_b = jax.random.uniform(
        k3, (QWEN_DIM,), dtype=jnp.float32, minval=-bound, maxval=bound
    )
    return query_tokens, proj_w_t, proj_b


if __name__ == "__main__":
    key = jax.random.PRNGKey(0)
    pkey, xkey = jax.random.split(key)
    query_tokens, proj_w_t, proj_b = init_params(pkey)

    B, S_ENC = 2, 32  # encoder hidden states (consumed only by the undefined decoder)
    x = jax.random.normal(xkey, (B, S_ENC, WHISPER_EMBED_DIM), dtype=jnp.float32)

    # Pure-JAX reference of the implemented path (broadcast + Linear), using
    # the same bf16 operand precision with f32 accumulation.
    q_ref = query_tokens.astype(jnp.float32)
    w_ref = proj_w_t.astype(jnp.float32)
    ref_tn = jnp.dot(q_ref, w_ref, precision=jax.lax.Precision.HIGHEST) + proj_b
    ref = jnp.broadcast_to(ref_tn[None], (B, WHISPER_MAX_LENGTH, QWEN_DIM))

    # 1) Default config: auto tn -> whole-N tile (grid=(1,)), bf16 output.
    out_bf16 = qformer_forward(x, query_tokens, proj_w_t, proj_b)
    out_bf16 = jax.block_until_ready(out_bf16)
    assert out_bf16.shape == (B, WHISPER_MAX_LENGTH, QWEN_DIM)
    assert out_bf16.dtype == jnp.bfloat16
    assert jnp.allclose(out_bf16.astype(jnp.float32), ref, atol=2e-2, rtol=2e-2)

    # 2) Explicit tn=128 (grid=(2,)) with f32 output, exercising the parallel
    #    axis and the tiled weight/bias BlockSpecs.
    out_f32 = qformer_forward(x, query_tokens, proj_w_t, proj_b, tn=128,
                              out_dtype=jnp.float32)
    out_f32 = jax.block_until_ready(out_f32)
    assert out_f32.shape == (B, WHISPER_MAX_LENGTH, QWEN_DIM)
    assert jnp.allclose(out_f32, ref, atol=1e-3, rtol=1e-3)

    print("KERNEL_OK")
</pallas_src>

<mosaic_0001>
module attributes {stable_mosaic.version = 11 : i64} {
  func.func @_qformer_proj_kernel(%arg0: i32, %arg1: memref<64x128xbf16, #tpu.memory_space<vmem>>, %arg2: memref<128x256xbf16, #tpu.memory_space<vmem>>, %arg3: memref<1x256xf32, #tpu.memory_space<vmem>>, %arg4: memref<64x256xbf16, #tpu.memory_space<vmem>>) attributes {dimension_semantics = [#tpu.dimension_semantics<parallel>], iteration_bounds = array<i64: 1>, scalar_prefetch = 0 : i64, scratch_operands = 0 : i64, tpu.core_type = #tpu.core_type<tc>, window_params = [{pipeline_mode = #tpu.pipeline_mode<synchronous>, transform_indices = @transform_0, window_bounds = array<i64: 64, 128>}, {transform_indices = @transform_1, window_bounds = array<i64: 128, 256>}, {transform_indices = @transform_2, window_bounds = array<i64: 1, 256>}, {transform_indices = @transform_3, window_bounds = array<i64: 64, 256>}]} {
    %c0 = arith.constant 0 : index
    %c0_0 = arith.constant 0 : index
    %0 = vector.load %arg1[%c0, %c0_0] : memref<64x128xbf16, #tpu.memory_space<vmem>>, vector<64x128xbf16>
    %c0_1 = arith.constant 0 : index
    %c0_2 = arith.constant 0 : index
    %1 = vector.load %arg2[%c0_1, %c0_2] : memref<128x256xbf16, #tpu.memory_space<vmem>>, vector<128x256xbf16>
    %cst = arith.constant dense<0.000000e+00> : vector<64x256xf32>
    %2 = tpu.matmul %0, %1, %cst {dimension_numbers = #tpu.dot_dimension_numbers<[1], [0], [0], [1], [0, 0, 1, 1], [], []>} : vector<64x128xbf16>, vector<128x256xbf16>, vector<64x256xf32> -> vector<64x256xf32>
    %c0_3 = arith.constant 0 : index
    %c0_4 = arith.constant 0 : index
    %3 = vector.load %arg3[%c0_3, %c0_4] : memref<1x256xf32, #tpu.memory_space<vmem>>, vector<1x256xf32>
    %4 = vector.broadcast %3 : vector<1x256xf32> to vector<64x256xf32>
    %5 = arith.addf %2, %4 : vector<64x256xf32>
    %6 = arith.truncf %5 : vector<64x256xf32> to vector<64x256xbf16>
    %c0_5 = arith.constant 0 : index
    %c0_6 = arith.constant 0 : index
    %7 = vector.load %arg4[%c0_5, %c0_6] : memref<64x256xbf16, #tpu.memory_space<vmem>>, vector<64x256xbf16>
    tpu.vector_store %arg4[%c0_5, %c0_6], %6 {strides = array<i32>} : memref<64x256xbf16, #tpu.memory_space<vmem>>, vector<64x256xbf16>,
    return
  }
  func.func @transform_0(%arg0: i32) -> (i32, i32) {
    %c0_i32 = arith.constant 0 : i32
    %c0_i32_0 = arith.constant 0 : i32
    %c0_i32_1 = arith.constant 0 : i32
    return %c0_i32, %c0_i32_0 : i32, i32
  }
  func.func @transform_1(%arg0: i32) -> (i32, i32) {
    %c0_i32 = arith.constant 0 : i32
    %c0_i32_0 = arith.constant 0 : i32
    return %c0_i32, %arg0 : i32, i32
  }
  func.func @transform_2(%arg0: i32) -> (i32, i32) {
    %c0_i32 = arith.constant 0 : i32
    %c0_i32_0 = arith.constant 0 : i32
    return %c0_i32, %arg0 : i32, i32
  }
  func.func @transform_3(%arg0: i32) -> (i32, i32) {
    %c0_i32 = arith.constant 0 : i32
    %c0_i32_0 = arith.constant 0 : i32
    return %c0_i32, %arg0 : i32, i32
  }
}

</mosaic_0001>

<bundles_post_ra>
// kernel: tpu_custom_call.1
= control target key start
LH: loop header
LB: loop body
LE: loop exit
PB: predicated region body
PF: predicated region fallthrough
CT: control target
= control target key end

     0   :  { %8 = vsyncpa [#allocation3], 0  ;;  %s531_s0 = inlined_call_operand.hbm [shape: bf16[64,128], index: 0, kind: input, shape index: {}]   ;;  %s532_s1 = inlined_call_operand.hbm [shape: bf16[128,256], index: 1, kind: input, shape index: {}]   ;;  %s533_s2 = inlined_call_operand.vmem [shape: f32[1,256], index: 2, kind: input, shape index: {}]   ;;  %s534_s3 = inlined_call_operand.hbm [shape: bf16[64,256], index: 3, kind: output, shape index: {}]  }
   0x1   :  { %9 = vsyncpa [#allocation6], 0 }
   0x2   :  { %10 = vsyncpa [#allocation4], 0  ;;  %s485_s12 = smov [#allocation2]  }
   0x3   :  { %s16_s13 = sshll.u32 %s485_s12, 4  ;;  %s17_s13 = int_to_ptr.vmem [resolvable:$true] %s16_s13 }
   0x4   :  { %s427_s14 = scalar_lea.vmem %s17_s13, 512  ;;  %p432_p1 = scmp.lt.s32.totalorder %s17_s13, %s17_s13 }
   0x5   :  { %p428_p0 = scmp.ne.s32.totalorder %s17_s13, %s427_s14  ;;  %p433_p2 = scmp.lt.s32.totalorder %s427_s14, %s427_s14 }
   0x7   :  { %p434_p3 = por %p433_p2, %p432_p1 }
   0x9   :  { %p435_p4 = pnand %p434_p3, %p428_p0 }
   0xb   :  { %438 = shalt.err (!%p435_p4)
}
   0xc   :  { %s486_s15 = smov 64   ;;  %s487_s16 = smov 4  }
   0xd   :  { %22 = dma.hbm_to_vmem [thread:$0]  %s531_s0, 512, %s17_s13, [#allocation3], %s486_s15, %s486_s15, %s487_s16  }
   0xe   :  { %s488_s19 = smov [#allocation5]  }
   0xf   :  { %s28_s20 = sshll.u32 %s488_s19, 4  ;;  %s29_s20 = int_to_ptr.vmem [resolvable:$true] %s28_s20 }
  0x10   :  { %s447_s21 = scalar_lea.vmem %s29_s20, 2048  ;;  %p452_p6 = scmp.lt.s32.totalorder %s29_s20, %s29_s20 }
  0x11   :  { %p448_p5 = scmp.ne.s32.totalorder %s29_s20, %s447_s21  ;;  %p453_p7 = scmp.lt.s32.totalorder %s447_s21, %s447_s21 }
  0x13   :  { %p454_p8 = por %p453_p7, %p452_p6 }
  0x15   :  { %p455_p9 = pnand %p454_p8, %p448_p5 }
  0x17   :  { %458 = shalt.err (!%p455_p9)
}
  0x18   :  { %s489_s22 = smov 128   ;;  %s490_s23 = smov 8  }
  0x19   :  { %34 = dma.hbm_to_vmem [thread:$0]  %s532_s1, 2048, %s29_s20, [#allocation6], %s489_s22, %s489_s22, %s490_s23  }
  0x1a   :  { %479 = dma.done.wait [#allocation3], 512  }
  0x1b   :  { %480 = vsyncadd [#allocation3], 4294966784 }
  0x1c   :  { %481 = dma.done.wait [#allocation6], 2048  }
  0x1d   :  { %482 = vsyncadd [#allocation6], 4294965248  ;;  %v491_v0 = vmov 0   ;;  %v391_v1 = vld [vmem:[#allocation5 + $0x74] ss:$8 sps:$4 sm:$0xff]   ;;  %v415_v17 = vld [vmem:[#allocation2] sm:$0xff]   ;;  %v70_v21 = vlaneseq }
  0x1e   :  { %216 = vmatprep.mubr.bf16.mxu0 %v491_v0  ;;  %236 = vmatprep.mubr.bf16.mxu1 %v491_v0  ;;  %v393_v2 = vld [vmem:[#allocation5 + $0x70] ss:$8 sps:$4 sm:$0xff]   ;;  %v394_v3 = vld [vmem:[#allocation5 + $0x64] ss:$8 sps:$4 sm:$0xff]   ;;  %v396_v4 = vld [vmem:[#allocation5 + $0x60] ss:$8 sps:$4 sm:$0xff]  }
  0x1f   :  { %184 = vmatprep.subr.bf16.mxu0 %v391_v1  ;;  %367 = vmatprep.subr.bf16.mxu1 %v391_v1  ;;  %v397_v5 = vld [vmem:[#allocation5 + $0x54] ss:$8 sps:$4 sm:$0xff]   ;;  %v399_v6 = vld [vmem:[#allocation5 + $0x50] ss:$8 sps:$4 sm:$0xff]   ;;  %v400_v7 = vld [vmem:[#allocation5 + $0x44] ss:$8 sps:$4 sm:$0xff]  }
  0x20   :  { %185 = vmatpush1.bf16.msra.mxu0 %v393_v2  ;;  %375 = vmatpush1.bf16.msra.mxu1 %v393_v2  ;;  %v402_v8 = vld [vmem:[#allocation5 + $0x40] ss:$8 sps:$4 sm:$0xff]   ;;  %v403_v9 = vld [vmem:[#allocation5 + $0x34] ss:$8 sps:$4 sm:$0xff]   ;;  %v405_v10 = vld [vmem:[#allocation5 + $0x30] ss:$8 sps:$4 sm:$0xff]  }
  0x21   :  { %186 = vmatprep.subr.bf16.mxu0 %v394_v3  ;;  %368 = vmatprep.subr.bf16.mxu1 %v394_v3  ;;  %v406_v11 = vld [vmem:[#allocation5 + $0x24] ss:$8 sps:$4 sm:$0xff]   ;;  %v408_v12 = vld [vmem:[#allocation5 + $0x20] ss:$8 sps:$4 sm:$0xff]   ;;  %v409_v13 = vld [vmem:[#allocation5 + $0x14] ss:$8 sps:$4 sm:$0xff]  }
  0x22   :  { %v411_v14 = vld [vmem:[#allocation5 + $0x10] ss:$8 sps:$4 sm:$0xff]   ;;  %v412_v15 = vld [vmem:[#allocation5 + $0x4] ss:$8 sps:$4 sm:$0xff]   ;;  %v414_v16 = vld [vmem:[#allocation5] ss:$8 sps:$4 sm:$0xff]  }
  0x23   :  { %v416_v18 = vld [vmem:[#allocation2 + $0x10] sm:$0xff]   ;;  %v417_v19 = vld [vmem:[#allocation2 + $0x8] sm:$0xff]   ;;  %v418_v20 = vld [vmem:[#allocation2 + $0x18] sm:$0xff]   ;;  %v71_v22 = vshrl.u32 %v70_v21, 7 }
  0x24   :  { %187 = vmatpush1.bf16.msra.mxu0 %v396_v4  ;;  %376 = vmatpush1.bf16.msra.mxu1 %v396_v4  ;;  %v68_v25 = vld [vmem:[%s533_s2] sm:$0x3]  ;;  %s492_s2 = smov [#allocation7]  }
  0x25   :  { %188 = vmatprep.subr.bf16.mxu0 %v397_v5  ;;  %369 = vmatprep.subr.bf16.mxu1 %v397_v5  ;;  %v72_v23 = vsub.s32 0, %v71_v22  ;;  %v76_v24 = vsub.s32 1, %v71_v22  ;;  %s318_s26 = sshll.u32 %s492_s2, 4  ;;  %s319_s26 = int_to_ptr.vmem [resolvable:$true] %s318_s26 }
  0x26   :  { %s459_s27 = scalar_lea.vmem %s319_s26, 1024  ;;  %p464_p11 = scmp.lt.s32.totalorder %s319_s26, %s319_s26 }
  0x27   :  { %v73_v26 = vrot.slane %v68_v25, %v72_v23  ;;  %v77_v27 = vrot.slane %v68_v25, %v76_v24  ;;  %p460_p10 = scmp.ne.s32.totalorder %s319_s26, %s459_s27  ;;  %p465_p12 = scmp.lt.s32.totalorder %s459_s27, %s459_s27 }
  0x28   :  { %189 = vmatpush1.bf16.msra.mxu0 %v399_v6  ;;  %377 = vmatpush1.bf16.msra.mxu1 %v399_v6 }
  0x29   :  { %190 = vmatprep.subr.bf16.mxu0 %v400_v7  ;;  %370 = vmatprep.subr.bf16.mxu1 %v400_v7  ;;  %p466_p13 = por %p465_p12, %p464_p11 }
  0x2b   :  { %p467_p0 = pnand %p466_p13, %p460_p10 }
  0x2c   :  { %191 = vmatpush1.bf16.msra.mxu0 %v402_v8  ;;  %378 = vmatpush1.bf16.msra.mxu1 %v402_v8 }
  0x2d   :  { %192 = vmatprep.subr.bf16.mxu0 %v403_v9  ;;  %371 = vmatprep.subr.bf16.mxu1 %v403_v9 }
  0x30   :  { %193 = vmatpush1.bf16.msra.mxu0 %v405_v10  ;;  %379 = vmatpush1.bf16.msra.mxu1 %v405_v10 }
  0x31   :  { %194 = vmatprep.subr.bf16.mxu0 %v406_v11  ;;  %372 = vmatprep.subr.bf16.mxu1 %v406_v11 }
  0x34   :  { %195 = vmatpush1.bf16.msra.mxu0 %v408_v12  ;;  %380 = vmatpush1.bf16.msra.mxu1 %v408_v12 }
  0x35   :  { %196 = vmatprep.subr.bf16.mxu0 %v409_v13  ;;  %373 = vmatprep.subr.bf16.mxu1 %v409_v13 }
  0x38   :  { %197 = vmatpush1.bf16.msra.mxu0 %v411_v14  ;;  %381 = vmatpush1.bf16.msra.mxu1 %v411_v14 }
  0x39   :  { %198 = vmatprep.subr.bf16.mxu0 %v412_v15  ;;  %374 = vmatprep.subr.bf16.mxu1 %v412_v15 }
  0x3c   :  { %199 = vmatpush1.bf16.msra.mxu0 %v414_v16  ;;  %382 = vmatpush1.bf16.msra.mxu1 %v414_v16 }
  0x3f   :  { %217 = vmatmul.mubr.bf16.vlgmr.msra.gmra.mxu0 %v415_v17  ;;  %237 = vmatmul.mubr.bf16.vlgmr.msra.gmra.mxu1 %v416_v18 }
  0x40   :  { %226 = vmatprep.mubr.bf16.mxu0 %v491_v0  ;;  %246 = vmatprep.mubr.bf16.mxu1 %v491_v0 }
  0x47   :  { %227 = vmatmul.mubr.bf16.gmra.mxu0 %v417_v19  ;;  %247 = vmatmul.mubr.bf16.gmra.mxu1 %v418_v20 }
  0xff   :  { %v218_v28 = vpop.f32.mrf.mxu0  ;;  %v238_v29 = vpop.f32.mrf.mxu1 }
 0x100   :  { %v219_v32 = vadd.f32 %v218_v28, %v73_v26  ;;  %v239_v33 = vadd.f32 %v238_v29, %v73_v26 }
 0x101   :  { %v220_v30 = vpop.f32.mrf.mxu0  ;;  %v240_v31 = vpop.f32.mrf.mxu1 }
 0x102   :  { %v221_v34 = vadd.f32 %v220_v30, %v77_v27  ;;  %v241_v35 = vadd.f32 %v240_v31, %v77_v27 }
 0x103   :  { %v222_v36 = vpop.f32.mrf.mxu0  ;;  %v242_v37 = vpop.f32.mrf.mxu1 }
 0x104   :  { %v359_v38 = vpack.c.bf16 %v221_v34, %v219_v32  ;;  %v363_v39 = vpack.c.bf16 %v241_v35, %v239_v33  ;;  %v223_v42 = vadd.f32 %v222_v36, %v73_v26  ;;  %v243_v43 = vadd.f32 %v242_v37, %v73_v26 }
 0x105   :  { %v224_v40 = vpop.f32.mrf.mxu0  ;;  %v244_v41 = vpop.f32.mrf.mxu1 }
 0x106   :  { %305 = vst [vmem:[#allocation7] sm:$0xff] %v359_v38  ;;  %309 = vst [vmem:[#allocation7 + $0x20] sm:$0xff] %v363_v39  ;;  %v225_v44 = vadd.f32 %v224_v40, %v77_v27  ;;  %v245_v45 = vadd.f32 %v244_v41, %v77_v27 }
 0x107   :  { %v228_v46 = vpop.f32.mrf.mxu0  ;;  %v248_v47 = vpop.f32.mrf.mxu1 }
 0x108   :  { %v360_v48 = vpack.c.bf16 %v225_v44, %v223_v42  ;;  %v364_v49 = vpack.c.bf16 %v245_v45, %v243_v43  ;;  %v229_v52 = vadd.f32 %v228_v46, %v73_v26  ;;  %v249_v53 = vadd.f32 %v248_v47, %v73_v26 }
 0x109   :  { %v230_v50 = vpop.f32.mrf.mxu0  ;;  %v250_v51 = vpop.f32.mrf.mxu1 }
 0x10a   :  { %306 = vst [vmem:[#allocation7 + $0x8] sm:$0xff] %v360_v48  ;;  %310 = vst [vmem:[#allocation7 + $0x28] sm:$0xff] %v364_v49  ;;  %v231_v54 = vadd.f32 %v230_v50, %v77_v27  ;;  %v251_v55 = vadd.f32 %v250_v51, %v77_v27 }
 0x10b   :  { %v232_v56 = vpop.f32.mrf.mxu0  ;;  %v252_v57 = vpop.f32.mrf.mxu1 }
 0x10c   :  { %v361_v58 = vpack.c.bf16 %v231_v54, %v229_v52  ;;  %v365_v59 = vpack.c.bf16 %v251_v55, %v249_v53  ;;  %v233_v62 = vadd.f32 %v232_v56, %v73_v26  ;;  %v253_v63 = vadd.f32 %v252_v57, %v73_v26 }
 0x10d   :  { %v234_v60 = vpop.f32.mrf.mxu0  ;;  %v254_v61 = vpop.f32.mrf.mxu1 }
 0x10e   :  { %307 = vst [vmem:[#allocation7 + $0x10] sm:$0xff] %v361_v58  ;;  %311 = vst [vmem:[#allocation7 + $0x30] sm:$0xff] %v365_v59  ;;  %v235_v0 = vadd.f32 %v234_v60, %v77_v27  ;;  %v255_v1 = vadd.f32 %v254_v61, %v77_v27 }
 0x110   :  { %v362_v2 = vpack.c.bf16 %v235_v0, %v233_v62  ;;  %v366_v3 = vpack.c.bf16 %v255_v1, %v253_v63 }
 0x112   :  { %308 = vst [vmem:[#allocation7 + $0x18] sm:$0xff] %v362_v2  ;;  %312 = vst [vmem:[#allocation7 + $0x38] sm:$0xff] %v366_v3 }
 0x113   :  { %470 = shalt.err (!%p467_p0)
}
 0x114   :  { %324 = dma.vmem_to_hbm [thread:$0]  %s319_s26, 1024, %s534_s3, [#allocation4], %s489_s22, %s489_s22, %s490_s23  }
 0x115   :  { %483 = dma.done.wait [#allocation4], 1024  }
 0x116   :  { %484 = vsyncadd [#allocation4], 4294966272 }
 0x117   :  { %328 = vsyncpa [#allocation3], 1 }
 0x118   :  { %329 = vsyncpa [#allocation6], 1 }
 0x119   :  { %330 = vsyncpa [#allocation4], 1 }

</bundles_post_ra>
